<compile_context>
chip_gen: v7x
topology: tpu7x:2x2x1
jax: 0.10.0
libtpu: 0.0.40
codegen_flags: <defaults>
</compile_context>

<pallas_src>
import functools

import jax
import jax.numpy as jnp
from jax.experimental import pallas as pl
from jax.experimental.pallas import tpu as pltpu

INPUT_SIZE = 7
HIDDEN_SIZES = [32, 32]
NUM_CLASSES = 2

LANE = 128      # last-dim tiling unit
SUBLANE = 8     # second-to-last-dim tiling unit


def _round_up(x: int, m: int) -> int:
    return ((x + m - 1) // m) * m


def _mlp_kernel(x_ref, w0_ref, wrest_ref, b_ref, o_ref, *,
                num_layers, mid_p, out_lanes, compute_dtype):
    """Fused forward: x -> (Linear+ReLU)*(L-1) -> Linear, all in one kernel.

    x_ref:     [tb, din0_p]            f32 input tile
    w0_ref:    [din0_p, mid_p]         bf16 first-layer weight (pre-transposed)
    wrest_ref: [mid_p, (L-1)*mid_p]    bf16 layers 1..L-1, concatenated on lanes
    b_ref:     [1, L*mid_p]            f32 biases, concatenated on lanes
    o_ref:     [tb, out_lanes]         f32 output tile (only out_lanes stored)
    """
    # Layer 0: matmul in compute_dtype, accumulate f32, bias+ReLU in f32.
    h = jnp.dot(x_ref[...].astype(compute_dtype), w0_ref[...],
                preferred_element_type=jnp.float32)
    h = jnp.maximum(h + b_ref[:, :mid_p], 0.0)

    # Hidden layers 1 .. L-2 (static slices of the concatenated weight/bias).
    for i in range(1, num_layers - 1):
        w = wrest_ref[:, (i - 1) * mid_p: i * mid_p]
        h = jnp.dot(h.astype(compute_dtype), w,
                    preferred_element_type=jnp.float32)
        h = jnp.maximum(h + b_ref[:, i * mid_p:(i + 1) * mid_p], 0.0)

    # Final layer: compute only the out_lanes columns that are actually stored
    # (narrow writeback -> 16x fewer HBM bytes than a 128-lane output).
    last = num_layers - 1
    w_last = wrest_ref[:, (last - 1) * mid_p: (last - 1) * mid_p + out_lanes]
    b_last = b_ref[:, last * mid_p: last * mid_p + out_lanes]
    out = jnp.dot(h.astype(compute_dtype), w_last,
                  preferred_element_type=jnp.float32) + b_last
    o_ref[...] = out.astype(o_ref.dtype)


def init_params(key, input_size, hidden_sizes, num_classes):
    """Deterministic init matching PyTorch nn.Linear shapes (weight: [out, in])."""
    layers = [input_size] + list(hidden_sizes) + [num_classes]
    params = []
    for i in range(len(layers) - 1):
        fan_in, fan_out = layers[i], layers[i + 1]
        key, kw, kb = jax.random.split(key, 3)
        bound = 1.0 / jnp.sqrt(jnp.float32(fan_in))
        w = jax.random.uniform(kw, (fan_out, fan_in), jnp.float32, -bound, bound)
        b = jax.random.uniform(kb, (fan_out,), jnp.float32, -bound, bound)
        params.append((w, b))
    return params


def prepare_params(params, num_classes, *, compute_dtype=jnp.bfloat16):
    """One-time prep (off the hot path): transpose weights to [in, out],
    zero-pad features, cast to compute_dtype, and concatenate layers 1..L-1
    into single weight / bias slabs.  Zero-padded lanes propagate exact zeros
    (bias padding is zero, ReLU(0)=0, zero weight rows), so the valid lanes
    match the unpadded computation."""
    num_layers = len(params)
    assert num_layers >= 2, "expected at least one hidden layer"
    dims = [params[0][0].shape[1]] + [w.shape[0] for w, _ in params]

    din0_p = _round_up(dims[0], SUBLANE)                 # input only padded to 8
    mid_p = max(_round_up(d, LANE) for d in dims[1:])    # 128 for this module
    out_lanes = _round_up(num_classes, SUBLANE)          # narrow output width

    w0_raw, b0_raw = params[0]
    w0 = (jnp.zeros((din0_p, mid_p), compute_dtype)
          .at[:dims[0], :dims[1]].set(w0_raw.T.astype(compute_dtype)))
    biases = [jnp.zeros((1, mid_p), jnp.float32).at[0, :dims[1]].set(b0_raw)]

    rest = []
    for i in range(1, num_layers):
        w, b = params[i]
        wp = (jnp.zeros((mid_p, mid_p), compute_dtype)
              .at[:dims[i], :dims[i + 1]].set(w.T.astype(compute_dtype)))
        rest.append(wp)
        biases.append(jnp.zeros((1, mid_p), jnp.float32).at[0, :dims[i + 1]].set(b))

    return dict(
        w0=w0,
        w_rest=jnp.concatenate(rest, axis=1),     # (mid_p, (L-1)*mid_p)
        b_all=jnp.concatenate(biases, axis=1),    # (1, L*mid_p)
        num_layers=num_layers,
        mid_p=mid_p,
        out_lanes=out_lanes,
        num_classes=num_classes,
        compute_dtype=compute_dtype,
    )


def neural_net_forward(x, prepared, *, batch_tile=2048):
    """x: [B, input_size] -> [B, num_classes] via one fused Pallas kernel."""
    bsz, din = x.shape
    w0, w_rest, b_all = prepared["w0"], prepared["w_rest"], prepared["b_all"]
    num_layers = prepared["num_layers"]
    mid_p = prepared["mid_p"]
    out_lanes = prepared["out_lanes"]
    num_classes = prepared["num_classes"]
    din0_p = w0.shape[0]

    # Batch tile: big (amortizes per-grid-step overhead), but split into >=2
    # grid steps when possible so v7x's two TensorCores both get work.
    if bsz < 2 * batch_tile:
        tb = _round_up(max(-(-bsz // 2), 1), SUBLANE)
    else:
        tb = batch_tile
    bsz_p = _round_up(bsz, tb)

    # Input padded only to (bsz_p, 8) -- tiny copy vs. the old 128-lane pad.
    if bsz_p != bsz or din != din0_p:
        x_p = jnp.zeros((bsz_p, din0_p), x.dtype).at[:bsz, :din].set(x)
    else:
        x_p = x

    kernel = functools.partial(
        _mlp_kernel, num_layers=num_layers, mid_p=mid_p,
        out_lanes=out_lanes, compute_dtype=prepared["compute_dtype"])

    out_padded = pl.pallas_call(
        kernel,
        out_shape=jax.ShapeDtypeStruct((bsz_p, out_lanes), jnp.float32),
        grid_spec=pl.GridSpec(
            grid=(bsz_p // tb,),
            in_specs=[
                pl.BlockSpec((tb, din0_p), lambda i: (i, 0)),
                # Weights/biases: constant block index -> loaded once, resident.
                pl.BlockSpec(w0.shape, lambda i: (0, 0)),
                pl.BlockSpec(w_rest.shape, lambda i: (0, 0)),
                pl.BlockSpec(b_all.shape, lambda i: (0, 0)),
            ],
            out_specs=pl.BlockSpec((tb, out_lanes), lambda i: (i, 0)),
        ),
        compiler_params=pltpu.CompilerParams(
            # Batch tiles are independent -> shard across TCs on v7x.
            dimension_semantics=("parallel",),
            # Headroom for big batch tiles; v5e's scoped default is only 16 MiB.
            vmem_limit_bytes=32 * 1024 * 1024,
        ),
    )(x_p, w0, w_rest, b_all)

    return out_padded[:bsz, :num_classes]


if __name__ == "__main__":
    key = jax.random.PRNGKey(0)
    key, kx = jax.random.split(key)

    params = init_params(key, INPUT_SIZE, HIDDEN_SIZES, NUM_CLASSES)
    prepared = prepare_params(params, NUM_CLASSES)  # transpose/pad/cast once

    def ref_forward(xv):
        # Pure-JAX f32 reference with PyTorch semantics (unpadded params).
        h = xv
        for i, (w, b) in enumerate(params):
            h = h @ w.T + b
            if i < len(params) - 1:
                h = jnp.maximum(h, 0.0)
        return h

    # batch=8: single-tile path; batch=300: batch padding + 2-step grid path.
    for batch in (8, 300):
        kx, sub = jax.random.split(kx)
        x = jax.random.normal(sub, (batch, INPUT_SIZE), dtype=jnp.float32)
        out = jax.block_until_ready(neural_net_forward(x, prepared))
        ref = ref_forward(x)
        assert out.shape == (batch, NUM_CLASSES)
        # bf16 matmul operands with f32 accumulation -> loosened tolerance.
        assert jnp.allclose(out, ref, atol=5e-2, rtol=5e-2), float(
            jnp.max(jnp.abs(out - ref)))

    print("KERNEL_OK")
</pallas_src>

<mosaic_0001>
module attributes {stable_mosaic.version = 11 : i64} {
  func.func @_mlp_kernel(%arg0: i32, %arg1: memref<8x8xf32, #tpu.memory_space<vmem>>, %arg2: memref<8x128xbf16, #tpu.memory_space<vmem>>, %arg3: memref<128x256xbf16, #tpu.memory_space<vmem>>, %arg4: memref<1x384xf32, #tpu.memory_space<vmem>>, %arg5: memref<8x8xf32, #tpu.memory_space<vmem>>) attributes {dimension_semantics = [#tpu.dimension_semantics<parallel>], iteration_bounds = array<i64: 1>, scalar_prefetch = 0 : i64, scratch_operands = 0 : i64, tpu.core_type = #tpu.core_type<tc>, window_params = [{transform_indices = @transform_0, window_bounds = array<i64: 8, 8>}, {pipeline_mode = #tpu.pipeline_mode<synchronous>, transform_indices = @transform_1, window_bounds = array<i64: 8, 128>}, {pipeline_mode = #tpu.pipeline_mode<synchronous>, transform_indices = @transform_2, window_bounds = array<i64: 128, 256>}, {pipeline_mode = #tpu.pipeline_mode<synchronous>, transform_indices = @transform_3, window_bounds = array<i64: 1, 384>}, {transform_indices = @transform_4, window_bounds = array<i64: 8, 8>}]} {
    %c0 = arith.constant 0 : index
    %c0_0 = arith.constant 0 : index
    %0 = vector.load %arg1[%c0, %c0_0] : memref<8x8xf32, #tpu.memory_space<vmem>>, vector<8x8xf32>
    %1 = arith.truncf %0 : vector<8x8xf32> to vector<8x8xbf16>
    %c0_1 = arith.constant 0 : index
    %c0_2 = arith.constant 0 : index
    %2 = vector.load %arg2[%c0_1, %c0_2] : memref<8x128xbf16, #tpu.memory_space<vmem>>, vector<8x128xbf16>
    %cst = arith.constant dense<0.000000e+00> : vector<8x128xf32>
    %3 = tpu.matmul %1, %2, %cst {dimension_numbers = #tpu.dot_dimension_numbers<[1], [0], [0], [1], [0, 0, 1, 1], [], []>} : vector<8x8xbf16>, vector<8x128xbf16>, vector<8x128xf32> -> vector<8x128xf32>
    %c0_3 = arith.constant 0 : index
    %c0_4 = arith.constant 0 : index
    %4 = vector.load %arg4[%c0_3, %c0_4] : memref<1x384xf32, #tpu.memory_space<vmem>>, vector<1x128xf32>
    %5 = vector.broadcast %4 : vector<1x128xf32> to vector<8x128xf32>
    %6 = arith.addf %3, %5 : vector<8x128xf32>
    %cst_5 = arith.constant 0.000000e+00 : f32
    %7 = vector.broadcast %cst_5 : f32 to vector<8x128xf32>
    %8 = arith.maximumf %6, %7 : vector<8x128xf32>
    %c0_6 = arith.constant 0 : index
    %c0_7 = arith.constant 0 : index
    %9 = vector.load %arg3[%c0_6, %c0_7] : memref<128x256xbf16, #tpu.memory_space<vmem>>, vector<128x128xbf16>
    %10 = arith.truncf %8 : vector<8x128xf32> to vector<8x128xbf16>
    %cst_8 = arith.constant dense<0.000000e+00> : vector<8x128xf32>
    %11 = tpu.matmul %10, %9, %cst_8 {dimension_numbers = #tpu.dot_dimension_numbers<[1], [0], [0], [1], [0, 0, 1, 1], [], []>} : vector<8x128xbf16>, vector<128x128xbf16>, vector<8x128xf32> -> vector<8x128xf32>
    %c0_9 = arith.constant 0 : index
    %c128 = arith.constant 128 : index
    %12 = vector.load %arg4[%c0_9, %c128] : memref<1x384xf32, #tpu.memory_space<vmem>>, vector<1x128xf32>
    %13 = vector.broadcast %12 : vector<1x128xf32> to vector<8x128xf32>
    %14 = arith.addf %11, %13 : vector<8x128xf32>
    %cst_10 = arith.constant 0.000000e+00 : f32
    %15 = vector.broadcast %cst_10 : f32 to vector<8x128xf32>
    %16 = arith.maximumf %14, %15 : vector<8x128xf32>
    %c0_11 = arith.constant 0 : index
    %c128_12 = arith.constant 128 : index
    %17 = vector.load %arg3[%c0_11, %c128_12] : memref<128x256xbf16, #tpu.memory_space<vmem>>, vector<128x8xbf16>
    %c0_13 = arith.constant 0 : index
    %c256 = arith.constant 256 : index
    %18 = vector.load %arg4[%c0_13, %c256] : memref<1x384xf32, #tpu.memory_space<vmem>>, vector<1x8xf32>
    %19 = arith.truncf %16 : vector<8x128xf32> to vector<8x128xbf16>
    %cst_14 = arith.constant dense<0.000000e+00> : vector<8x8xf32>
    %20 = tpu.matmul %19, %17, %cst_14 {dimension_numbers = #tpu.dot_dimension_numbers<[1], [0], [0], [1], [0, 0, 1, 1], [], []>} : vector<8x128xbf16>, vector<128x8xbf16>, vector<8x8xf32> -> vector<8x8xf32>
    %21 = vector.broadcast %18 : vector<1x8xf32> to vector<8x8xf32>
    %22 = arith.addf %20, %21 : vector<8x8xf32>
    %c0_15 = arith.constant 0 : index
    %c0_16 = arith.constant 0 : index
    %23 = vector.load %arg5[%c0_15, %c0_16] : memref<8x8xf32, #tpu.memory_space<vmem>>, vector<8x8xf32>
    tpu.vector_store %arg5[%c0_15, %c0_16], %22 {strides = array<i32>} : memref<8x8xf32, #tpu.memory_space<vmem>>, vector<8x8xf32>,
    return
  }
  func.func @transform_0(%arg0: i32) -> (i32, i32) {
    %c0_i32 = arith.constant 0 : i32
    %c0_i32_0 = arith.constant 0 : i32
    return %arg0, %c0_i32 : i32, i32
  }
  func.func @transform_1(%arg0: i32) -> (i32, i32) {
    %c0_i32 = arith.constant 0 : i32
    %c0_i32_0 = arith.constant 0 : i32
    %c0_i32_1 = arith.constant 0 : i32
    return %c0_i32, %c0_i32_0 : i32, i32
  }
  func.func @transform_2(%arg0: i32) -> (i32, i32) {
    %c0_i32 = arith.constant 0 : i32
    %c0_i32_0 = arith.constant 0 : i32
    %c0_i32_1 = arith.constant 0 : i32
    return %c0_i32, %c0_i32_0 : i32, i32
  }
  func.func @transform_3(%arg0: i32) -> (i32, i32) {
    %c0_i32 = arith.constant 0 : i32
    %c0_i32_0 = arith.constant 0 : i32
    %c0_i32_1 = arith.constant 0 : i32
    return %c0_i32, %c0_i32_0 : i32, i32
  }
  func.func @transform_4(%arg0: i32) -> (i32, i32) {
    %c0_i32 = arith.constant 0 : i32
    %c0_i32_0 = arith.constant 0 : i32
    return %arg0, %c0_i32 : i32, i32
  }
}

</mosaic_0001>

<bundles_post_ra>
// kernel: tpu_custom_call.1
= control target key start
LH: loop header
LB: loop body
LE: loop exit
PB: predicated region body
PF: predicated region fallthrough
CT: control target
= control target key end

     0   :  { %9 = vsyncpa [#allocation3], 0  ;;  %s676_s0 = inlined_call_operand.hbm [shape: f32[8,8], index: 0, kind: input, shape index: {}]   ;;  %s677_s1 = inlined_call_operand.hbm [shape: bf16[8,128], index: 1, kind: input, shape index: {}]   ;;  %s678_s2 = inlined_call_operand.hbm [shape: bf16[128,256], index: 2, kind: input, shape index: {}]   ;;  %s679_s3 = inlined_call_operand.vmem [shape: f32[1,384], index: 3, kind: input, shape index: {}]   ;;  %s680_s4 = inlined_call_operand.hbm [shape: f32[8,8], index: 4, kind: output, shape index: {}]  }
   0x1   :  { %10 = vsyncpa [#allocation6], 0 }
   0x2   :  { %11 = vsyncpa [#allocation4], 0  ;;  %s561_s15 = smov [#allocation5]   ;;  %s562_s17 = smov [#allocation2]  }
   0x3   :  { %s28_s16 = sshll.u32 %s561_s15, 4  ;;  %s18_s18 = sshll.u32 %s562_s17, 4  ;;  %s29_s16 = int_to_ptr.vmem [resolvable:$true] %s28_s16  ;;  %s19_s18 = int_to_ptr.vmem [resolvable:$true] %s18_s18 }
   0x4   :  { %s467_s21 = scalar_lea.hbm %s677_s1, 64 }
   0x5   :  { %p468_p0 = scmp.ne.s32.totalorder %s677_s1, %s467_s21  ;;  %p471_p1 = scmp.lt.u32.totalorder %s467_s21, %s677_s1 }
   0x7   :  { %p473_p2 = pnand %p471_p1, %p468_p0 }
   0x9   :  { %476 = shalt.err (!%p473_p2)
}
   0xa   :  { %s477_s26 = scalar_lea.vmem %s29_s16, 64  ;;  %p482_p4 = scmp.lt.s32.totalorder %s29_s16, %s29_s16 }
   0xb   :  { %p478_p3 = scmp.ne.s32.totalorder %s29_s16, %s477_s26  ;;  %p483_p5 = scmp.lt.s32.totalorder %s477_s26, %s477_s26 }
   0xd   :  { %p484_p6 = por %p483_p5, %p482_p4 }
   0xf   :  { %p485_p7 = pnand %p484_p6, %p478_p3 }
  0x11   :  { %488 = shalt.err (!%p485_p7)
}
  0x12   :  { %31 = dma.hbm_to_vmem [thread:$0]  %s677_s1, 64, %s29_s16, [#allocation6]  }
  0x13   :  { %s489_s5 = scalar_lea.hbm %s676_s0, 128 }
  0x14   :  { %p490_p8 = scmp.ne.s32.totalorder %s676_s0, %s489_s5  ;;  %p493_p9 = scmp.lt.u32.totalorder %s489_s5, %s676_s0 }
  0x16   :  { %p495_p10 = pnand %p493_p9, %p490_p8 }
  0x18   :  { %498 = shalt.err (!%p495_p10)
}
  0x19   :  { %s499_s10 = scalar_lea.vmem %s19_s18, 128  ;;  %p504_p12 = scmp.lt.s32.totalorder %s19_s18, %s19_s18 }
  0x1a   :  { %p500_p11 = scmp.ne.s32.totalorder %s19_s18, %s499_s10  ;;  %p505_p13 = scmp.lt.s32.totalorder %s499_s10, %s499_s10 }
  0x1c   :  { %p506_p0 = por %p505_p13, %p504_p12 }
  0x1e   :  { %p507_p1 = pnand %p506_p0, %p500_p11 }
  0x20   :  { %510 = shalt.err (!%p507_p1)
}
  0x21   :  { %21 = dma.hbm_to_vmem [thread:$0]  %s676_s0, 128, %s19_s18, [#allocation3]  }
  0x22   :  { %s563_s12 = smov [#allocation7]   ;;  %s511_s16 = scalar_lea.hbm %s678_s2, 2048 }
  0x23   :  { %s37_s13 = sshll.u32 %s563_s12, 4  ;;  %p512_p2 = scmp.ne.s32.totalorder %s678_s2, %s511_s16  ;;  %s38_s13 = int_to_ptr.vmem [resolvable:$true] %s37_s13 }
  0x24   :  { %p515_p3 = scmp.lt.u32.totalorder %s511_s16, %s678_s2 }
  0x26   :  { %p517_p4 = pnand %p515_p3, %p512_p2 }
  0x28   :  { %520 = shalt.err (!%p517_p4)
}
  0x29   :  { %s521_s22 = scalar_lea.vmem %s38_s13, 2048  ;;  %p526_p6 = scmp.lt.s32.totalorder %s38_s13, %s38_s13 }
  0x2a   :  { %p522_p5 = scmp.ne.s32.totalorder %s38_s13, %s521_s22  ;;  %p527_p7 = scmp.lt.s32.totalorder %s521_s22, %s521_s22 }
  0x2c   :  { %p528_p8 = por %p527_p7, %p526_p6 }
  0x2e   :  { %p529_p9 = pnand %p528_p8, %p522_p5 }
  0x30   :  { %532 = shalt.err (!%p529_p9)
}
  0x31   :  { %s564_s0 = smov 128   ;;  %s565_s18 = smov 8  }
  0x32   :  { %43 = dma.hbm_to_vmem [thread:$0]  %s678_s2, 2048, %s38_s13, [#allocation6], %s564_s0, %s564_s0, %s565_s18  }
  0x33   :  { %555 = dma.done.wait [#allocation3], 128  }
  0x34   :  { %556 = vsyncadd [#allocation3], 4294967168 }
  0x35   :  { %557 = dma.done.wait [#allocation6], 2112  }
  0x36   :  { %558 = vsyncadd [#allocation6], 4294965184  ;;  %v566_v0 = vmov 0.0   ;;  %vm567_vm0 = vmmov 0   ;;  %vm70_vm1 = vcmask 1043456   ;;  %v56_v2 = vld [vmem:[#allocation2] sm:$0xff] }
  0x37   :  { %397 = vmatprep.subr.bf16.mxu0 %v566_v0  ;;  %399 = vmatprep.mubr.msk.bf16.mxu0 %vm567_vm0, %v566_v0  ;;  %v58_v1 = vld [vmem:[#allocation5] sm:$0xf]  ;;  %v57_v4 = vpack.c.bf16 %v56_v2, %v56_v2  ;;  %v451_v5 = vld [vmem:[#allocation7] ss:$8 sps:$4 sm:$0xff]   ;;  %vm66_vm2 = vcmask 64512   ;;  %s568_s30 = smov [#allocation8]  }
  0x38   :  { %403 = vmatprep.subr.bf16.mxu1 %v566_v0  ;;  %419 = vmatprep.mubr.msk.bf16.mxu1 %vm567_vm0, %v566_v0  ;;  %v72_v3 = vsel %vm70_vm1, %v58_v1, 0  ;;  %v452_v6 = vld [vmem:[#allocation7 + $0x10] ss:$8 sps:$4 sm:$0xff]   ;;  %v453_v7 = vld [vmem:[#allocation7 + $0x20] ss:$8 sps:$4 sm:$0xff]   ;;  %s347_s5 = sshll.u32 %s568_s30, 4  ;;  %s348_s5 = int_to_ptr.vmem [resolvable:$true] %s347_s5 }
  0x39   :  { %398 = vmatpush3.bf16.msra.mxu0 %v72_v3  ;;  %404 = vmatpush3.bf16.msra.mxu1 %v451_v5  ;;  %v454_v8 = vld [vmem:[#allocation7 + $0x30] ss:$8 sps:$4 sm:$0xff]   ;;  %v455_v9 = vld [vmem:[#allocation7 + $0x40] ss:$8 sps:$4 sm:$0xff]   ;;  %v459_v13 = vld [vmem:[#allocation7 + $0x4] ss:$8 sps:$4 sm:$0xff]   ;;  %p538_p11 = scmp.lt.s32.totalorder %s348_s5, %s348_s5 }
  0x3a   :  { %423 = vmatprep.subr.bf16.mxu0 %v566_v0  ;;  %405 = vmatprep.subr.bf16.mxu1 %v566_v0  ;;  %v456_v10 = vld [vmem:[#allocation7 + $0x50] ss:$8 sps:$4 sm:$0xff]   ;;  %v457_v11 = vld [vmem:[#allocation7 + $0x60] ss:$8 sps:$4 sm:$0xff]   ;;  %v460_v14 = vld [vmem:[#allocation7 + $0x14] ss:$8 sps:$4 sm:$0xff]  }
  0x3b   :  { %v458_v12 = vld [vmem:[#allocation7 + $0x70] ss:$8 sps:$4 sm:$0xff]   ;;  %v461_v15 = vld [vmem:[#allocation7 + $0x24] ss:$8 sps:$4 sm:$0xff]   ;;  %v462_v16 = vld [vmem:[#allocation7 + $0x34] ss:$8 sps:$4 sm:$0xff]  }
  0x3c   :  { %400 = vmatmul.mubr.msk.bf16.vlgmr.msra.gmra.mrb[0].mxu0 %vm66_vm2, %v57_v4  ;;  %v463_v17 = vld [vmem:[#allocation7 + $0x44] ss:$8 sps:$4 sm:$0xff]   ;;  %v464_v18 = vld [vmem:[#allocation7 + $0x54] ss:$8 sps:$4 sm:$0xff]   ;;  %s533_s6 = scalar_lea.vmem %s348_s5, 128 }
  0x3d   :  { %439 = vmatprep.mubr.msk.bf16.mxu0 %vm567_vm0, %v566_v0  ;;  %406 = vmatpush3.bf16.msra.mxu1 %v452_v6  ;;  %v357_v19 = vld [vmem:[%s679_s3] ss:$0 sm:$0xff]  ;;  %v465_v27 = vld [vmem:[#allocation7 + $0x64] ss:$8 sps:$4 sm:$0xff]   ;;  %v359_v29 = vld [vmem:[%s679_s3 + $0x1] ss:$0 sm:$0xff]  ;;  %p534_p10 = scmp.ne.s32.totalorder %s348_s5, %s533_s6  ;;  %p539_p12 = scmp.lt.s32.totalorder %s533_s6, %s533_s6 }
  0x3e   :  { %407 = vmatprep.subr.bf16.mxu1 %v566_v0  ;;  %424 = vmatpush3.bf16.msra.mxu0 %v459_v13  ;;  %v466_v28 = vld [vmem:[#allocation7 + $0x74] ss:$8 sps:$4 sm:$0xff]  }
  0x3f   :  { %425 = vmatprep.subr.bf16.mxu0 %v566_v0  ;;  %v368_v37 = vld [vmem:[%s679_s3 + $0x2] ss:$0 sm:$0xff]  ;;  %p540_p13 = por %p539_p12, %p538_p11 }
  0x41   :  { %408 = vmatpush3.bf16.msra.mxu1 %v453_v7  ;;  %p541_p0 = pnand %p540_p13, %p534_p10 }
  0x42   :  { %409 = vmatprep.subr.bf16.mxu1 %v566_v0  ;;  %426 = vmatpush3.bf16.msra.mxu0 %v460_v14 }
  0x43   :  { %427 = vmatprep.subr.bf16.mxu0 %v566_v0 }
  0x45   :  { %410 = vmatpush3.bf16.msra.mxu1 %v454_v8 }
  0x46   :  { %411 = vmatprep.subr.bf16.mxu1 %v566_v0  ;;  %428 = vmatpush3.bf16.msra.mxu0 %v461_v15 }
  0x47   :  { %429 = vmatprep.subr.bf16.mxu0 %v566_v0 }
  0x49   :  { %412 = vmatpush3.bf16.msra.mxu1 %v455_v9 }
  0x4a   :  { %413 = vmatprep.subr.bf16.mxu1 %v566_v0  ;;  %430 = vmatpush3.bf16.msra.mxu0 %v462_v16 }
  0x4b   :  { %431 = vmatprep.subr.bf16.mxu0 %v566_v0 }
  0x4d   :  { %414 = vmatpush3.bf16.msra.mxu1 %v456_v10 }
  0x4e   :  { %415 = vmatprep.subr.bf16.mxu1 %v566_v0  ;;  %432 = vmatpush3.bf16.msra.mxu0 %v463_v17 }
  0x4f   :  { %433 = vmatprep.subr.bf16.mxu0 %v566_v0 }
  0x51   :  { %416 = vmatpush3.bf16.msra.mxu1 %v457_v11 }
  0x52   :  { %417 = vmatprep.subr.bf16.mxu1 %v566_v0  ;;  %434 = vmatpush3.bf16.msra.mxu0 %v464_v18 }
  0x53   :  { %435 = vmatprep.subr.bf16.mxu0 %v566_v0 }
  0x55   :  { %418 = vmatpush3.bf16.msra.mxu1 %v458_v12 }
  0x56   :  { %436 = vmatpush3.bf16.msra.mxu0 %v465_v27 }
  0x57   :  { %437 = vmatprep.subr.bf16.mxu0 %v566_v0 }
  0x5a   :  { %438 = vmatpush3.bf16.msra.mxu0 %v466_v28 }
 0x10f   :  { %v108_v20 = vpop.f32.mrb[0].mxu0 }
 0x110   :  { %v109_v21 = vadd.f32 %v357_v19, %v108_v20  ;;  %v401_v22 = vpop.f32.mrb[1].mxu0 }
 0x111   :  { %v111_v23 = vpop.f32.mrb[2].mxu0 }
 0x112   :  { %v114_v24 = vmax.f32 %v109_v21, 0.0  ;;  %v402_v25 = vpop.f32.mrb[3].mxu0 }
 0x114   :  { %v131_v26 = vpack.c.bf16 %v114_v24, %v114_v24 }
 0x116   :  { %420 = vmatmul.mubr.bf16.vlgmr.msra.gmra.mrb[0].mxu1 %v131_v26 }
 0x1e9   :  { %v221_v30 = vpop.f32.mrb[0].mxu1 }
 0x1ea   :  { %v222_v31 = vadd.f32 %v359_v29, %v221_v30  ;;  %v421_v32 = vpop.f32.mrb[1].mxu1 }
 0x1eb   :  { %v224_v33 = vpop.f32.mrb[2].mxu1 }
 0x1ec   :  { %v227_v34 = vmax.f32 %v222_v31, 0.0  ;;  %v422_v35 = vpop.f32.mrb[3].mxu1 }
 0x1ee   :  { %v245_v36 = vpack.c.bf16 %v227_v34, %v227_v34 }
 0x1f0   :  { %440 = vmatmul.mubr.bf16.vlgmr.msra.gmra.mrb[4].mxu0 %v245_v36 }
 0x2c3   :  { %v334_v38 = vpop.f32.mrb[4].mxu0 }
 0x2c4   :  { %v335_v39 = vadd.f32 %v368_v37, %v334_v38  ;;  %v441_v40 = vpop.f32.mrb[5].mxu0 }
 0x2c5   :  { %v337_v41 = vpop.f32.mrb[6].mxu0 }
 0x2c6   :  { %340 = vst.msk [vmem:[#allocation8] sm:$0xff] %vm66_vm2, %v335_v39  ;;  %v442_v42 = vpop.f32.mrb[7].mxu0 }
 0x2c7   :  { %544 = shalt.err (!%p541_p0)
}
 0x2c8   :  { %s545_s3 = scalar_lea.hbm %s680_s4, 128 }
 0x2c9   :  { %p546_p1 = scmp.ne.s32.totalorder %s680_s4, %s545_s3  ;;  %p549_p2 = scmp.lt.u32.totalorder %s545_s3, %s680_s4 }
 0x2cb   :  { %p551_p3 = pnand %p549_p2, %p546_p1 }
 0x2cd   :  { %554 = shalt.err (!%p551_p3)
}
 0x2ce   :  { %350 = dma.vmem_to_hbm [thread:$0]  %s348_s5, 128, %s680_s4, [#allocation4]  }
 0x2cf   :  { %559 = dma.done.wait [#allocation4], 128  }
 0x2d0   :  { %560 = vsyncadd [#allocation4], 4294967168 }
 0x2d1   :  { %354 = vsyncpa [#allocation3], 1 }
 0x2d2   :  { %355 = vsyncpa [#allocation6], 1 }
 0x2d3   :  { %356 = vsyncpa [#allocation4], 1 }

</bundles_post_ra>
